<compile_context>
chip_gen: v7x
topology: tpu7x:2x2x1
jax: 0.10.0
libtpu: 0.0.40
codegen_flags: <defaults>
</compile_context>

<pallas_src>
import math

import jax
import jax.numpy as jnp
from jax.experimental import pallas as pl
from jax.experimental.pallas import tpu as pltpu

LANE = 128          # TPU lane width: hidden width padded to this
DEFAULT_TM = 1024   # rows per grid step


def _round_up(x, m):
    return ((x + m - 1) // m) * m


def _choose_tm(M, tm_max):
    """Row-tile size. The channel-major output block uses TM as its lane dim,
    so TM must be a multiple of 128 or equal to M. Prefer >=2 grid steps so the
    'parallel' axis can span both TensorCores on v7x."""
    if M <= LANE:
        return M                                   # single full-extent block
    half = _round_up(pl.cdiv(M, 2), LANE)
    return max(LANE, min(tm_max, half))


# ---------------------------------------------------------------------------
# Fused 3-layer PReLU MLP kernel (Linear -> PReLU -> Linear -> PReLU -> Linear)
# with the output transpose fused in (channel-major, logical-width, bf16 store)
# ---------------------------------------------------------------------------
def _mlp_kernel(a_ref,            # VMEM (2, H) f32: row0 = alpha1, row1 = alpha2
                x_ref,            # VMEM (TM, Din) f32 (pipelined per grid step)
                w1_ref, b1_ref,   # VMEM (Din, H) bf16, (1, H) f32
                w2_ref, b2_ref,   # VMEM (H, H)  bf16, (1, H) f32
                w3_ref, b3_ref,   # VMEM (H, Dp) bf16, (1, Dp) f32
                o_ref):           # VMEM (Dout, TM) bf16  (channel-major)
    x = x_ref[...].astype(jnp.bfloat16)        # bf16 into the MXU (native path)
    a1 = a_ref[0:1, :]                         # (1, H) broadcasts over the row tile
    a2 = a_ref[1:2, :]

    h = jnp.dot(x, w1_ref[...], preferred_element_type=jnp.float32) + b1_ref[...]
    h = jnp.where(h > 0, h, a1 * h)                                    # PReLU
    h = jnp.dot(h.astype(jnp.bfloat16), w2_ref[...],
                preferred_element_type=jnp.float32) + b2_ref[...]
    h = jnp.where(h > 0, h, a2 * h)                                    # PReLU
    out = jnp.dot(h.astype(jnp.bfloat16), w3_ref[...],
                  preferred_element_type=jnp.float32) + b3_ref[...]    # (TM, Dp)

    # Fused transpose (rides the XLU slot) -> channel-major store of only the
    # logical output channels, in bf16.
    out_t = out.T                                                      # (Dp, TM)
    o_ref[...] = out_t[0:o_ref.shape[0], :].astype(o_ref.dtype)        # (Dout, TM)


def internal_mlp_cm(x, params, tm_max=None):
    """x: (M, Din) f32 -> (Dout, M) bf16, channel-major (transpose fused in-kernel)."""
    M, Din = x.shape
    Dh = params["w1"].shape[1]          # padded hidden width (128)
    Dp = params["w3"].shape[1]          # padded output width of w3
    Dout = params["out_dim"]            # logical output channels actually stored

    if tm_max is None:
        tm_max = 2048 if M >= 8192 else DEFAULT_TM
    tm = _choose_tm(M, tm_max)
    grid = (pl.cdiv(M, tm),)            # ragged last block handled by Pallas clipping

    alphas = jnp.stack([jnp.full((Dh,), params["a1"], jnp.float32),
                        jnp.full((Dh,), params["a2"], jnp.float32)])

    flops = 2 * M * (Din * Dh + Dh * Dh + Dh * Dp)
    bytes_accessed = (4 * M * Din + 2 * M * Dout
                      + 2 * (Din * Dh + Dh * Dh + Dh * Dp)
                      + 4 * (4 * Dh + Dp))

    out = pl.pallas_call(
        _mlp_kernel,
        out_shape=jax.ShapeDtypeStruct((Dout, M), jnp.bfloat16),
        grid=grid,
        in_specs=[
            pl.BlockSpec((2, Dh), lambda i: (0, 0)),        # alphas (VMEM-resident)
            pl.BlockSpec((tm, Din), lambda i: (i, 0)),      # x tile (pipelined)
            pl.BlockSpec((Din, Dh), lambda i: (0, 0)),      # w1 (resident, bf16)
            pl.BlockSpec((1, Dh), lambda i: (0, 0)),        # b1
            pl.BlockSpec((Dh, Dh), lambda i: (0, 0)),       # w2
            pl.BlockSpec((1, Dh), lambda i: (0, 0)),        # b2
            pl.BlockSpec((Dh, Dp), lambda i: (0, 0)),       # w3
            pl.BlockSpec((1, Dp), lambda i: (0, 0)),        # b3
        ],
        out_specs=pl.BlockSpec((Dout, tm), lambda i: (0, i)),   # channel-major
        compiler_params=pltpu.CompilerParams(
            dimension_semantics=("parallel",)),
        cost_estimate=pl.CostEstimate(flops=flops, transcendentals=0,
                                      bytes_accessed=bytes_accessed),
    )(alphas, x, params["w1"], params["b1"], params["w2"], params["b2"],
      params["w3"], params["b3"])
    return out


# ---------------------------------------------------------------------------
# Plain-XLA InternalMlp (same bf16-matmul numerics as the Pallas kernel).
# Used for rho (only B rows -> a Pallas launch would be pure fixed cost) and as
# the verification reference for phi.
# ---------------------------------------------------------------------------
def mlp_xla(x, p):
    bf = jnp.bfloat16
    h = jnp.dot(x.astype(bf), p["w1"], preferred_element_type=jnp.float32) + p["b1"]
    h = jnp.where(h > 0, h, p["a1"] * h)
    h = jnp.dot(h.astype(bf), p["w2"], preferred_element_type=jnp.float32) + p["b2"]
    h = jnp.where(h > 0, h, p["a2"] * h)
    return jnp.dot(h.astype(bf), p["w3"], preferred_element_type=jnp.float32) + p["b3"]


# ---------------------------------------------------------------------------
# Parameter init (PyTorch Linear/PReLU semantics); weights stored bf16 for the
# MXU, biases/alphas f32.  Hidden/output widths optionally zero-padded
# (PReLU(0)=0 keeps padded lanes exactly zero).
# ---------------------------------------------------------------------------
def _linear_init(kw, kb, fan_in, fan_out, pad_in, pad_out):
    bound = 1.0 / math.sqrt(fan_in)
    w = jax.random.uniform(kw, (fan_out, fan_in), jnp.float32, -bound, bound).T
    b = jax.random.uniform(kb, (fan_out,), jnp.float32, -bound, bound)
    w = jnp.pad(w, ((0, pad_in - fan_in), (0, pad_out - fan_out)))
    b = jnp.pad(b, (0, pad_out - fan_out)).reshape(1, pad_out)
    return w.astype(jnp.bfloat16), b


def init_mlp_params(key, in_dim, out_dim, hidden=50, hidden_pad=None, out_pad=None):
    """InternalMlp: Linear(in,h)+PReLU, Linear(h,h)+PReLU, Linear(h,out)."""
    hidden_pad = hidden if hidden_pad is None else hidden_pad
    out_pad = out_dim if out_pad is None else out_pad
    ks = jax.random.split(key, 6)
    w1, b1 = _linear_init(ks[0], ks[1], in_dim, hidden, in_dim, hidden_pad)
    w2, b2 = _linear_init(ks[2], ks[3], hidden, hidden, hidden_pad, hidden_pad)
    w3, b3 = _linear_init(ks[4], ks[5], hidden, out_dim, hidden_pad, out_pad)
    return {"w1": w1, "b1": b1, "a1": jnp.float32(0.25),
            "w2": w2, "b2": b2, "a2": jnp.float32(0.25),
            "w3": w3, "b3": b3, "out_dim": out_dim}


# ---------------------------------------------------------------------------
# FSPool (relaxed=False): featurewise descending sort + piecewise-linear
# weighted sum over the set axis, on channel-major (C, B, S) input.
# ---------------------------------------------------------------------------
def fs_pool(x, n, weight, n_pieces):
    """x: (C, B, S); n: (B,) valid set sizes; weight: (C, n_pieces+1) -> (B, C)."""
    x = x.astype(jnp.float32)
    C, B, S = x.shape
    pos = jnp.arange(S, dtype=jnp.float32)[None, :]                   # (1, S)
    denom = jnp.maximum(n.astype(jnp.float32) - 1.0, 1.0)[:, None]    # (B, 1)
    sizes = pos / denom                                               # (B, S)
    mask = sizes <= 1.0                                               # (B, S)
    sizes = jnp.minimum(sizes, 1.0)

    # piecewise-linear pooling weights interpolated at each relative position
    index = n_pieces * sizes
    idx = jnp.floor(index).astype(jnp.int32)
    frac = index - idx.astype(jnp.float32)
    left = jnp.take(weight, idx, axis=1)                              # (C, B, S)
    right = jnp.take(weight, jnp.minimum(idx + 1, n_pieces), axis=1)  # (C, B, S)
    w = (1.0 - frac)[None] * left + frac[None] * right                # (C, B, S)

    # TODO(synk): the featurewise descending sort has no clean Pallas TPU
    # lowering; it stays in plain XLA.
    # Dtype-aware sentinel instead of the original additive -99999, so unbounded
    # phi activations can never out-rank masked slots (identical result for n>=2).
    neg = jnp.float32(jnp.finfo(jnp.float32).min / 2)
    xm = jnp.where(mask[None, :, :], x, neg)
    xs = -jnp.sort(-xm, axis=2)                                       # descending
    pooled = (xs * w * mask[None, :, :].astype(jnp.float32)).sum(axis=2)  # (C, B)
    return pooled.T                                                   # (B, C)


# ---------------------------------------------------------------------------
# DeepSetsInvariantFSPool forward
# ---------------------------------------------------------------------------
def deep_sets_invariant_fspool(x, mask, params):
    """x: (B, S, Din) set elements; mask: (B, S, 1) 0/1 validity."""
    B, S, Din = x.shape
    C = params["phi"]["out_dim"]
    h_cm = internal_mlp_cm(x.reshape(B * S, Din), params["phi"])      # (C, B*S) bf16, Pallas
    h_cbs = h_cm.reshape(C, B, S)                                     # layout-only; no XLA transpose
    n = mask.sum(axis=1).squeeze(-1)                                  # (B,)
    pooled = fs_pool(h_cbs, n, params["pool_w"], params["n_pieces"])  # (B, C)
    return mlp_xla(pooled, params["rho"])                             # rho (tiny M=B): plain XLA


# Reference path: row-major XLA phi + explicit transposes (matches the PyTorch
# permute((0,2,1)) data flow) with the same bf16-matmul / bf16-store numerics.
def deep_sets_reference(x, mask, params):
    B, S, Din = x.shape
    C = params["phi"]["out_dim"]
    h = mlp_xla(x.reshape(B * S, Din), params["phi"])[:, :C]          # (B*S, C) f32
    h = h.astype(jnp.bfloat16).astype(jnp.float32)                    # match kernel's bf16 store
    h_bcs = jnp.transpose(h.reshape(B, S, C), (0, 2, 1))              # x.permute((0,2,1))
    h_cbs = jnp.transpose(h_bcs, (1, 0, 2))                           # (C, B, S) for fs_pool
    n = mask.sum(axis=1).squeeze(-1)
    pooled = fs_pool(h_cbs, n, params["pool_w"], params["n_pieces"])
    return mlp_xla(pooled, params["rho"])


if __name__ == "__main__":
    key = jax.random.PRNGKey(0)
    k_x, k_phi, k_rho, k_pool = jax.random.split(key, 4)

    batch, set_size, input_dim = 4, 32, 16
    hidden, latent, out_dim, n_pieces = 50, 32, 10, 20

    x = jax.random.normal(k_x, (batch, set_size, input_dim), jnp.float32)
    n_valid = jnp.array([set_size, 17, 32, 9], dtype=jnp.int32)       # variable set sizes
    mask = (jnp.arange(set_size)[None, :] < n_valid[:, None]).astype(jnp.float32)[..., None]

    pool_w = 0.1 * jax.random.normal(k_pool, (latent, n_pieces + 1), jnp.float32)

    params = {
        # phi: padded hidden (128 lanes) + padded w3 columns; kernel stores only
        # the logical `latent` channels (channel-major).
        "phi": init_mlp_params(k_phi, input_dim, latent, hidden,
                               hidden_pad=LANE, out_pad=LANE),
        # rho runs in plain XLA -> no padding needed at all.
        "rho": init_mlp_params(k_rho, latent, out_dim, hidden),
        "pool_w": pool_w,
        "n_pieces": n_pieces,
    }

    out = deep_sets_invariant_fspool(x, mask, params)
    jax.block_until_ready(out)

    ref = deep_sets_reference(x, mask, params)
    assert out.shape == (batch, out_dim), out.shape
    max_err = float(jnp.max(jnp.abs(out - ref)))
    assert jnp.allclose(out, ref, atol=5e-3, rtol=5e-3), max_err

    print("KERNEL_OK")
</pallas_src>

<mosaic_0001>
module attributes {stable_mosaic.version = 11 : i64} {
  func.func @_mlp_kernel(%arg0: i32, %arg1: memref<2x128xf32, #tpu.memory_space<vmem>>, %arg2: memref<128x16xf32, #tpu.memory_space<vmem>>, %arg3: memref<16x128xbf16, #tpu.memory_space<vmem>>, %arg4: memref<1x128xf32, #tpu.memory_space<vmem>>, %arg5: memref<128x128xbf16, #tpu.memory_space<vmem>>, %arg6: memref<1x128xf32, #tpu.memory_space<vmem>>, %arg7: memref<128x128xbf16, #tpu.memory_space<vmem>>, %arg8: memref<1x128xf32, #tpu.memory_space<vmem>>, %arg9: memref<32x128xbf16, #tpu.memory_space<vmem>>) attributes {dimension_semantics = [#tpu.dimension_semantics<parallel>], iteration_bounds = array<i64: 1>, scalar_prefetch = 0 : i64, scratch_operands = 0 : i64, tpu.core_type = #tpu.core_type<tc>, window_params = [{pipeline_mode = #tpu.pipeline_mode<synchronous>, transform_indices = @transform_0, window_bounds = array<i64: 2, 128>}, {transform_indices = @transform_1, window_bounds = array<i64: 128, 16>}, {pipeline_mode = #tpu.pipeline_mode<synchronous>, transform_indices = @transform_2, window_bounds = array<i64: 16, 128>}, {pipeline_mode = #tpu.pipeline_mode<synchronous>, transform_indices = @transform_3, window_bounds = array<i64: 1, 128>}, {pipeline_mode = #tpu.pipeline_mode<synchronous>, transform_indices = @transform_4, window_bounds = array<i64: 128, 128>}, {pipeline_mode = #tpu.pipeline_mode<synchronous>, transform_indices = @transform_5, window_bounds = array<i64: 1, 128>}, {pipeline_mode = #tpu.pipeline_mode<synchronous>, transform_indices = @transform_6, window_bounds = array<i64: 128, 128>}, {pipeline_mode = #tpu.pipeline_mode<synchronous>, transform_indices = @transform_7, window_bounds = array<i64: 1, 128>}, {transform_indices = @transform_8, window_bounds = array<i64: 32, 128>}]} {
    %c0 = arith.constant 0 : index
    %c0_0 = arith.constant 0 : index
    %0 = vector.load %arg2[%c0, %c0_0] : memref<128x16xf32, #tpu.memory_space<vmem>>, vector<128x16xf32>
    %1 = arith.truncf %0 : vector<128x16xf32> to vector<128x16xbf16>
    %c0_1 = arith.constant 0 : index
    %c0_2 = arith.constant 0 : index
    %2 = vector.load %arg1[%c0_1, %c0_2] : memref<2x128xf32, #tpu.memory_space<vmem>>, vector<1x128xf32>
    %c1 = arith.constant 1 : index
    %c0_3 = arith.constant 0 : index
    %3 = vector.load %arg1[%c1, %c0_3] : memref<2x128xf32, #tpu.memory_space<vmem>>, vector<1x128xf32>
    %c0_4 = arith.constant 0 : index
    %c0_5 = arith.constant 0 : index
    %4 = vector.load %arg3[%c0_4, %c0_5] : memref<16x128xbf16, #tpu.memory_space<vmem>>, vector<16x128xbf16>
    %cst = arith.constant dense<0.000000e+00> : vector<128x128xf32>
    %5 = tpu.matmul %1, %4, %cst {dimension_numbers = #tpu.dot_dimension_numbers<[1], [0], [0], [1], [0, 0, 1, 1], [], []>} : vector<128x16xbf16>, vector<16x128xbf16>, vector<128x128xf32> -> vector<128x128xf32>
    %c0_6 = arith.constant 0 : index
    %c0_7 = arith.constant 0 : index
    %6 = vector.load %arg4[%c0_6, %c0_7] : memref<1x128xf32, #tpu.memory_space<vmem>>, vector<1x128xf32>
    %7 = vector.broadcast %6 : vector<1x128xf32> to vector<128x128xf32>
    %8 = arith.addf %5, %7 : vector<128x128xf32>
    %cst_8 = arith.constant 0.000000e+00 : f32
    %9 = vector.broadcast %cst_8 : f32 to vector<128x128xf32>
    %10 = arith.cmpf ogt, %8, %9 : vector<128x128xf32>
    %11 = vector.broadcast %2 : vector<1x128xf32> to vector<128x128xf32>
    %12 = arith.mulf %11, %8 : vector<128x128xf32>
    %13 = arith.select %10, %8, %12 : vector<128x128xi1>, vector<128x128xf32>
    %14 = arith.truncf %13 : vector<128x128xf32> to vector<128x128xbf16>
    %c0_9 = arith.constant 0 : index
    %c0_10 = arith.constant 0 : index
    %15 = vector.load %arg5[%c0_9, %c0_10] : memref<128x128xbf16, #tpu.memory_space<vmem>>, vector<128x128xbf16>
    %cst_11 = arith.constant dense<0.000000e+00> : vector<128x128xf32>
    %16 = tpu.matmul %14, %15, %cst_11 {dimension_numbers = #tpu.dot_dimension_numbers<[1], [0], [0], [1], [0, 0, 1, 1], [], []>} : vector<128x128xbf16>, vector<128x128xbf16>, vector<128x128xf32> -> vector<128x128xf32>
    %c0_12 = arith.constant 0 : index
    %c0_13 = arith.constant 0 : index
    %17 = vector.load %arg6[%c0_12, %c0_13] : memref<1x128xf32, #tpu.memory_space<vmem>>, vector<1x128xf32>
    %18 = vector.broadcast %17 : vector<1x128xf32> to vector<128x128xf32>
    %19 = arith.addf %16, %18 : vector<128x128xf32>
    %cst_14 = arith.constant 0.000000e+00 : f32
    %20 = vector.broadcast %cst_14 : f32 to vector<128x128xf32>
    %21 = arith.cmpf ogt, %19, %20 : vector<128x128xf32>
    %22 = vector.broadcast %3 : vector<1x128xf32> to vector<128x128xf32>
    %23 = arith.mulf %22, %19 : vector<128x128xf32>
    %24 = arith.select %21, %19, %23 : vector<128x128xi1>, vector<128x128xf32>
    %25 = arith.truncf %24 : vector<128x128xf32> to vector<128x128xbf16>
    %c0_15 = arith.constant 0 : index
    %c0_16 = arith.constant 0 : index
    %26 = vector.load %arg7[%c0_15, %c0_16] : memref<128x128xbf16, #tpu.memory_space<vmem>>, vector<128x128xbf16>
    %cst_17 = arith.constant dense<0.000000e+00> : vector<128x128xf32>
    %27 = tpu.matmul %25, %26, %cst_17 {dimension_numbers = #tpu.dot_dimension_numbers<[1], [0], [0], [1], [0, 0, 1, 1], [], []>} : vector<128x128xbf16>, vector<128x128xbf16>, vector<128x128xf32> -> vector<128x128xf32>
    %c0_18 = arith.constant 0 : index
    %c0_19 = arith.constant 0 : index
    %28 = vector.load %arg8[%c0_18, %c0_19] : memref<1x128xf32, #tpu.memory_space<vmem>>, vector<1x128xf32>
    %29 = vector.broadcast %28 : vector<1x128xf32> to vector<128x128xf32>
    %30 = arith.addf %27, %29 : vector<128x128xf32>
    %31 = tpu.transpose %30, [1, 0] : vector<128x128xf32> -> vector<128x128xf32>
    %32 = vector.extract_strided_slice %31 {offsets = [0, 0], sizes = [32, 128], strides = [1, 1]} : vector<128x128xf32> to vector<32x128xf32>
    %33 = arith.truncf %32 : vector<32x128xf32> to vector<32x128xbf16>
    %c0_20 = arith.constant 0 : index
    %c0_21 = arith.constant 0 : index
    %34 = vector.load %arg9[%c0_20, %c0_21] : memref<32x128xbf16, #tpu.memory_space<vmem>>, vector<32x128xbf16>
    tpu.vector_store %arg9[%c0_20, %c0_21], %33 {strides = array<i32>} : memref<32x128xbf16, #tpu.memory_space<vmem>>, vector<32x128xbf16>,
    return
  }
  func.func @transform_0(%arg0: i32) -> (i32, i32) {
    %c0_i32 = arith.constant 0 : i32
    %c0_i32_0 = arith.constant 0 : i32
    %c0_i32_1 = arith.constant 0 : i32
    return %c0_i32, %c0_i32_0 : i32, i32
  }
  func.func @transform_1(%arg0: i32) -> (i32, i32) {
    %c0_i32 = arith.constant 0 : i32
    %c0_i32_0 = arith.constant 0 : i32
    return %arg0, %c0_i32 : i32, i32
  }
  func.func @transform_2(%arg0: i32) -> (i32, i32) {
    %c0_i32 = arith.constant 0 : i32
    %c0_i32_0 = arith.constant 0 : i32
    %c0_i32_1 = arith.constant 0 : i32
    return %c0_i32, %c0_i32_0 : i32, i32
  }
  func.func @transform_3(%arg0: i32) -> (i32, i32) {
    %c0_i32 = arith.constant 0 : i32
    %c0_i32_0 = arith.constant 0 : i32
    %c0_i32_1 = arith.constant 0 : i32
    return %c0_i32, %c0_i32_0 : i32, i32
  }
  func.func @transform_4(%arg0: i32) -> (i32, i32) {
    %c0_i32 = arith.constant 0 : i32
    %c0_i32_0 = arith.constant 0 : i32
    %c0_i32_1 = arith.constant 0 : i32
    return %c0_i32, %c0_i32_0 : i32, i32
  }
  func.func @transform_5(%arg0: i32) -> (i32, i32) {
    %c0_i32 = arith.constant 0 : i32
    %c0_i32_0 = arith.constant 0 : i32
    %c0_i32_1 = arith.constant 0 : i32
    return %c0_i32, %c0_i32_0 : i32, i32
  }
  func.func @transform_6(%arg0: i32) -> (i32, i32) {
    %c0_i32 = arith.constant 0 : i32
    %c0_i32_0 = arith.constant 0 : i32
    %c0_i32_1 = arith.constant 0 : i32
    return %c0_i32, %c0_i32_0 : i32, i32
  }
  func.func @transform_7(%arg0: i32) -> (i32, i32) {
    %c0_i32 = arith.constant 0 : i32
    %c0_i32_0 = arith.constant 0 : i32
    %c0_i32_1 = arith.constant 0 : i32
    return %c0_i32, %c0_i32_0 : i32, i32
  }
  func.func @transform_8(%arg0: i32) -> (i32, i32) {
    %c0_i32 = arith.constant 0 : i32
    %c0_i32_0 = arith.constant 0 : i32
    return %c0_i32, %arg0 : i32, i32
  }
}

</mosaic_0001>

<bundles_post_ra>
// kernel: tpu_custom_call.1
= control target key start
LH: loop header
LB: loop body
LE: loop exit
PB: predicated region body
PF: predicated region fallthrough
CT: control target
= control target key end

     0   :  { %vm72_vm0 = vcmask 130048   ;;  %s1188_s0 = inlined_call_operand.vmem [shape: f32[2,128], index: 0, kind: input, shape index: {}]   ;;  %s1189_s1 = inlined_call_operand.vmem [shape: f32[128,16], index: 1, kind: input, shape index: {}]   ;;  %s1190_s2 = inlined_call_operand.vmem [shape: bf16[16,128], index: 2, kind: input, shape index: {}]   ;;  %s1191_s3 = inlined_call_operand.vmem [shape: f32[1,128], index: 3, kind: input, shape index: {}]   ;;  %s1192_s4 = inlined_call_operand.vmem [shape: bf16[128,128], index: 4, kind: input, shape index: {}]   ;;  %s1193_s5 = inlined_call_operand.vmem [shape: f32[1,128], index: 5, kind: input, shape index: {}]   ;;  %s1194_s6 = inlined_call_operand.vmem [shape: bf16[128,128], index: 6, kind: input, shape index: {}]   ;;  %s1195_s7 = inlined_call_operand.vmem [shape: f32[1,128], index: 7, kind: input, shape index: {}]   ;;  %s1196_s8 = inlined_call_operand.hbm [shape: bf16[32,128], index: 8, kind: output, shape index: {}]  }
   0x1   :  { %v893_v0 = vld [vmem:[%s1190_s2] sm:$0xff]   ;;  %v32_v2 = vld [vmem:[%s1189_s1 + $0x8] sm:$0xff]  ;;  %v33_v3 = vld [vmem:[%s1189_s1 + $0x10] sm:$0xff] }
   0x2   :  { %v31_v1 = vld [vmem:[%s1189_s1] sm:$0xff]  ;;  %808 = vmatprep.subr.bf16.mxu0 %v893_v0  ;;  %v34_v5 = vld [vmem:[%s1189_s1 + $0x18] sm:$0xff]  ;;  %v36_v7 = vld [vmem:[%s1189_s1 + $0x28] sm:$0xff] }
   0x3   :  { %v47_v4 = vpack.c.bf16 %v32_v2, %v31_v1  ;;  %v35_v6 = vld [vmem:[%s1189_s1 + $0x20] sm:$0xff]  ;;  %809 = vmatpush3.bf16.msra.mxu0 %v893_v0  ;;  %v48_v8 = vpack.c.bf16 %v34_v5, %v33_v3  ;;  %v37_v10 = vld [vmem:[%s1189_s1 + $0x30] sm:$0xff]  ;;  %v38_v11 = vld [vmem:[%s1189_s1 + $0x38] sm:$0xff] }
   0x4   :  { %v49_v9 = vpack.c.bf16 %v36_v7, %v35_v6  ;;  %v39_v12 = vld [vmem:[%s1189_s1 + $0x40] sm:$0xff]  ;;  %v40_v13 = vld [vmem:[%s1189_s1 + $0x48] sm:$0xff]  ;;  %v50_v16 = vpack.c.bf16 %v38_v11, %v37_v10  ;;  %v896_v18 = vld [vmem:[%s1192_s4 + $0x10] sm:$0xff]  }
   0x5   :  { %810 = vmatprep.mubr.msk.bf16.mxu0 %vm72_vm0, %v47_v4  ;;  %v894_v14 = vld [vmem:[%s1192_s4] sm:$0xff]   ;;  %v895_v15 = vld [vmem:[%s1192_s4 + $0x8] sm:$0xff]   ;;  %v51_v17 = vpack.c.bf16 %v40_v13, %v39_v12  ;;  %v41_v19 = vld [vmem:[%s1189_s1 + $0x50] sm:$0xff] }
   0x6   :  { %811 = vmatmul.mubr.msk.bf16.vlgmr.msra.gmra.mrb[0].mxu0 %vm72_vm0, %v48_v8  ;;  %826 = vmatprep.subr.bf16.mxu1 %v894_v14  ;;  %v42_v20 = vld [vmem:[%s1189_s1 + $0x58] sm:$0xff]  ;;  %v43_v22 = vld [vmem:[%s1189_s1 + $0x60] sm:$0xff]  ;;  %v44_v23 = vld [vmem:[%s1189_s1 + $0x68] sm:$0xff] }
   0x7   :  { %814 = vmatprep.mubr.msk.bf16.mxu0 %vm72_vm0, %v49_v9  ;;  %827 = vmatpush3.bf16.msra.mxu1 %v894_v14  ;;  %v897_v21 = vld [vmem:[%s1192_s4 + $0x18] sm:$0xff]   ;;  %v52_v24 = vpack.c.bf16 %v42_v20, %v41_v19  ;;  %v53_v25 = vpack.c.bf16 %v44_v23, %v43_v22  ;;  %v898_v26 = vld [vmem:[%s1192_s4 + $0x20] sm:$0xff]  }
   0x8   :  { %828 = vmatprep.subr.bf16.mxu1 %v895_v15 }
   0xb   :  { %829 = vmatpush3.bf16.msra.mxu1 %v895_v15 }
   0xc   :  { %830 = vmatprep.subr.bf16.mxu1 %v896_v18 }
   0xe   :  { %815 = vmatmul.mubr.msk.bf16.gmra.mrb[4].mxu0 %vm72_vm0, %v50_v16 }
   0xf   :  { %818 = vmatprep.mubr.msk.bf16.mxu0 %vm72_vm0, %v51_v17  ;;  %831 = vmatpush3.bf16.msra.mxu1 %v896_v18 }
  0x10   :  { %832 = vmatprep.subr.bf16.mxu1 %v897_v21 }
  0x11   :  { %13 = vsyncpa [#allocation3], 0  ;;  %v45_v27 = vld [vmem:[%s1189_s1 + $0x70] sm:$0xff]  ;;  %v46_v28 = vld [vmem:[%s1189_s1 + $0x78] sm:$0xff] }
  0x12   :  { %v54_v29 = vpack.c.bf16 %v46_v28, %v45_v27  ;;  %v899_v30 = vld [vmem:[%s1192_s4 + $0x28] sm:$0xff]   ;;  %v900_v31 = vld [vmem:[%s1192_s4 + $0x30] sm:$0xff]   ;;  %v901_v32 = vld [vmem:[%s1192_s4 + $0x38] sm:$0xff]  }
  0x13   :  { %833 = vmatpush3.bf16.msra.mxu1 %v897_v21  ;;  %v902_v33 = vld [vmem:[%s1194_s6] sm:$0xff]   ;;  %v903_v34 = vld [vmem:[%s1194_s6 + $0x8] sm:$0xff]   ;;  %v904_v35 = vld [vmem:[%s1194_s6 + $0x10] sm:$0xff]  }
  0x14   :  { %834 = vmatprep.subr.bf16.mxu1 %v898_v26  ;;  %858 = vmatprep.subr.bf16.mxu0 %v902_v33  ;;  %v905_v36 = vld [vmem:[%s1194_s6 + $0x18] sm:$0xff]   ;;  %v906_v37 = vld [vmem:[%s1194_s6 + $0x20] sm:$0xff]   ;;  %v907_v38 = vld [vmem:[%s1194_s6 + $0x28] sm:$0xff]  }
  0x15   :  { %859 = vmatpush3.bf16.msra.mxu0 %v902_v33  ;;  %v1086_v39 = vld [vmem:[%s1191_s3] ss:$0 sm:$0xff] }
  0x16   :  { %819 = vmatmul.mubr.msk.bf16.gmra.mrb[8].mxu0 %vm72_vm0, %v52_v24  ;;  %860 = vmatprep.subr.bf16.mxu0 %v903_v34  ;;  %v1091_v40 = vld [vmem:[%s1188_s0] ss:$0 sm:$0xff] }
  0x17   :  { %822 = vmatprep.mubr.msk.bf16.mxu0 %vm72_vm0, %v53_v25  ;;  %835 = vmatpush3.bf16.msra.mxu1 %v898_v26 }
  0x18   :  { %836 = vmatprep.subr.bf16.mxu1 %v899_v30 }
  0x19   :  { %861 = vmatpush3.bf16.msra.mxu0 %v903_v34 }
  0x1a   :  { %862 = vmatprep.subr.bf16.mxu0 %v904_v35 }
  0x1b   :  { %837 = vmatpush3.bf16.msra.mxu1 %v899_v30 }
  0x1c   :  { %838 = vmatprep.subr.bf16.mxu1 %v900_v31 }
  0x1d   :  { %863 = vmatpush3.bf16.msra.mxu0 %v904_v35 }
  0x1e   :  { %823 = vmatmul.mubr.msk.bf16.gmra.mrb[12].mxu0 %vm72_vm0, %v54_v29  ;;  %864 = vmatprep.subr.bf16.mxu0 %v905_v36 }
  0x1f   :  { %839 = vmatpush3.bf16.msra.mxu1 %v900_v31 }
  0x20   :  { %840 = vmatprep.subr.bf16.mxu1 %v901_v32 }
  0x21   :  { %865 = vmatpush3.bf16.msra.mxu0 %v905_v36 }
  0x22   :  { %866 = vmatprep.subr.bf16.mxu0 %v906_v37 }
  0x23   :  { %841 = vmatpush3.bf16.msra.mxu1 %v901_v32 }
  0x25   :  { %867 = vmatpush3.bf16.msra.mxu0 %v906_v37 }
  0x26   :  { %868 = vmatprep.subr.bf16.mxu0 %v907_v38 }
  0x29   :  { %869 = vmatpush3.bf16.msra.mxu0 %v907_v38 }
  0xd9   :  { %v812_v41 = vpop.f32.mrb[0].mxu0 }
  0xda   :  { %v140_v42 = vadd.f32 %v812_v41, %v1086_v39  ;;  %v131_v43 = vpop.f32.mrb[1].mxu0 }
  0xdb   :  { %v132_v44 = vadd.f32 %v1086_v39, %v131_v43  ;;  %v813_v45 = vpop.f32.mrb[2].mxu0 }
  0xdc   :  { %v216_v46 = vmul.f32 %v1091_v40, %v140_v42  ;;  %v143_v47 = vadd.f32 %v813_v45, %v1086_v39  ;;  %v134_v48 = vpop.f32.mrb[3].mxu0  ;;  %vm196_vm1 = vcmp.gt.f32.partialorder %v140_v42, 0.0 }
  0xdd   :  { %v214_v49 = vmul.f32 %v1091_v40, %v132_v44  ;;  %v135_v50 = vadd.f32 %v1086_v39, %v134_v48  ;;  %vm194_vm3 = vcmp.gt.f32.partialorder %v132_v44, 0.0 }
  0xde   :  { %vm197_vm2 = vcmp.gt.f32.partialorder %v143_v47, 0.0  ;;  %v217_v51 = vmul.f32 %v1091_v40, %v143_v47  ;;  %v232_v53 = vsel %vm196_vm1, %v140_v42, %v216_v46 }
  0xdf   :  { %v215_v52 = vmul.f32 %v1091_v40, %v135_v50  ;;  %vm195_vm4 = vcmp.gt.f32.partialorder %v135_v50, 0.0  ;;  %v230_v56 = vsel %vm194_vm3, %v132_v44, %v214_v49 }
  0xe0   :  { %v233_v54 = vsel %vm197_vm2, %v143_v47, %v217_v51  ;;  %v908_v51 = vld [vmem:[%s1194_s6 + $0x30] sm:$0xff]  }
  0xe1   :  { %v816_v55 = vpop.f32.mrb[4].mxu0  ;;  %v231_v57 = vsel %vm195_vm4, %v135_v50, %v215_v52  ;;  %v247_v58 = vpack.c.bf16 %v233_v54, %v232_v53  ;;  %870 = vmatprep.subr.bf16.mxu0 %v908_v51  ;;  %v1139_v52 = vld [vmem:[%s1188_s0 + $0x1] ss:$0 sm:$0xff] }
  0xe2   :  { %v156_v59 = vadd.f32 %v816_v55, %v1086_v39  ;;  %v147_v60 = vpop.f32.mrb[5].mxu0  ;;  %v246_v61 = vpack.c.bf16 %v231_v57, %v230_v56  ;;  %871 = vmatpush3.bf16.msra.mxu0 %v908_v51 }
  0xe3   :  { %v148_v62 = vadd.f32 %v1086_v39, %v147_v60  ;;  %v817_v63 = vpop.f32.mrb[6].mxu0 }
  0xe4   :  { %vm200_vm5 = vcmp.gt.f32.partialorder %v156_v59, 0.0  ;;  %v220_v0 = vmul.f32 %v1091_v40, %v156_v59  ;;  %v159_v1 = vadd.f32 %v817_v63, %v1086_v39  ;;  %v150_v2 = vpop.f32.mrb[7].mxu0  ;;  %842 = vmatprep.mubr.bf16.mxu1 %v246_v61 }
  0xe5   :  { %vm198_vm6 = vcmp.gt.f32.partialorder %v148_v62, 0.0  ;;  %v218_v3 = vmul.f32 %v1091_v40, %v148_v62  ;;  %v151_v4 = vadd.f32 %v1086_v39, %v150_v2  ;;  %843 = vmatmul.mubr.bf16.vlgmr.msra.gmra.mrb[0].mxu1 %v247_v58 }
  0xe6   :  { %vm201_vm7 = vcmp.gt.f32.partialorder %v159_v1, 0.0  ;;  %v221_v5 = vmul.f32 %v1091_v40, %v159_v1  ;;  %v236_v6 = vsel %vm200_vm5, %v156_v59, %v220_v0 }
  0xe7   :  { %vm199_vm8 = vcmp.gt.f32.partialorder %v151_v4, 0.0  ;;  %v219_v7 = vmul.f32 %v1091_v40, %v151_v4  ;;  %v234_v8 = vsel %vm198_vm6, %v148_v62, %v218_v3 }
  0xe8   :  { %v237_v9 = vsel %vm201_vm7, %v159_v1, %v221_v5 }
  0xe9   :  { %v820_v10 = vpop.f32.mrb[8].mxu0  ;;  %v235_v11 = vsel %vm199_vm8, %v151_v4, %v219_v7  ;;  %v249_v12 = vpack.c.bf16 %v237_v9, %v236_v6 }
  0xea   :  { %v172_v13 = vadd.f32 %v820_v10, %v1086_v39  ;;  %v163_v14 = vpop.f32.mrb[9].mxu0  ;;  %v248_v15 = vpack.c.bf16 %v235_v11, %v234_v8 }
  0xeb   :  { %v164_v16 = vadd.f32 %v1086_v39, %v163_v14  ;;  %v821_v17 = vpop.f32.mrb[10].mxu0 }
  0xec   :  { %vm204_vm9 = vcmp.gt.f32.partialorder %v172_v13, 0.0  ;;  %v224_v18 = vmul.f32 %v1091_v40, %v172_v13  ;;  %v175_v19 = vadd.f32 %v821_v17, %v1086_v39  ;;  %846 = vmatprep.mubr.bf16.mxu1 %v248_v15  ;;  %v166_v20 = vpop.f32.mrb[11].mxu0 }
  0xed   :  { %vm202_vm10 = vcmp.gt.f32.partialorder %v164_v16, 0.0  ;;  %v222_v21 = vmul.f32 %v1091_v40, %v164_v16  ;;  %v167_v22 = vadd.f32 %v1086_v39, %v166_v20  ;;  %847 = vmatmul.mubr.bf16.gmra.mrb[4].mxu1 %v249_v12 }
  0xee   :  { %vm205_vm11 = vcmp.gt.f32.partialorder %v175_v19, 0.0  ;;  %v225_v23 = vmul.f32 %v1091_v40, %v175_v19  ;;  %v240_v24 = vsel %vm204_vm9, %v172_v13, %v224_v18 }
  0xef   :  { %vm203_vm12 = vcmp.gt.f32.partialorder %v167_v22, 0.0  ;;  %v223_v25 = vmul.f32 %v1091_v40, %v167_v22  ;;  %v238_v26 = vsel %vm202_vm10, %v164_v16, %v222_v21 }
  0xf0   :  { %v241_v27 = vsel %vm205_vm11, %v175_v19, %v225_v23 }
  0xf1   :  { %v239_v28 = vsel %vm203_vm12, %v167_v22, %v223_v25  ;;  %v251_v29 = vpack.c.bf16 %v241_v27, %v240_v24  ;;  %v824_v30 = vpop.f32.mrb[12].mxu0 }
  0xf2   :  { %v250_v31 = vpack.c.bf16 %v239_v28, %v238_v26  ;;  %v188_v32 = vadd.f32 %v824_v30, %v1086_v39  ;;  %v179_v33 = vpop.f32.mrb[13].mxu0 }
  0xf3   :  { %v180_v34 = vadd.f32 %v1086_v39, %v179_v33  ;;  %v825_v35 = vpop.f32.mrb[14].mxu0 }
  0xf4   :  { %850 = vmatprep.mubr.bf16.mxu1 %v250_v31  ;;  %vm208_vm13 = vcmp.gt.f32.partialorder %v188_v32, 0.0  ;;  %v228_v36 = vmul.f32 %v1091_v40, %v188_v32  ;;  %v191_v37 = vadd.f32 %v825_v35, %v1086_v39  ;;  %v182_v38 = vpop.f32.mrb[15].mxu0 }
  0xf5   :  { %851 = vmatmul.mubr.bf16.gmra.mrb[8].mxu1 %v251_v29  ;;  %vm206_vm14 = vcmp.gt.f32.partialorder %v180_v34, 0.0  ;;  %v226_v41 = vmul.f32 %v1091_v40, %v180_v34  ;;  %v183_v42 = vadd.f32 %v1086_v39, %v182_v38  ;;  %v909_v39 = vld [vmem:[%s1194_s6 + $0x38] sm:$0xff]   ;;  %s934_s6 = smov [#allocation2]  }
  0xf6   :  { %vm209_vm15 = vcmp.gt.f32.partialorder %v191_v37, 0.0  ;;  %v229_v43 = vmul.f32 %v1091_v40, %v191_v37  ;;  %v244_v44 = vsel %vm208_vm13, %v188_v32, %v228_v36  ;;  %872 = vmatprep.subr.bf16.mxu0 %v909_v39 }
  0xf7   :  { %vm207_vm0 = vcmp.gt.f32.partialorder %v183_v42, 0.0  ;;  %v227_v45 = vmul.f32 %v1091_v40, %v183_v42  ;;  %v242_v46 = vsel %vm206_vm14, %v180_v34, %v226_v41  ;;  %873 = vmatpush3.bf16.msra.mxu0 %v909_v39  ;;  %v1134_v40 = vld [vmem:[%s1193_s5] ss:$0 sm:$0xff] }
  0xf8   :  { %v245_v47 = vsel %vm209_vm15, %v191_v37, %v229_v43 }
  0xf9   :  { %v243_v48 = vsel %vm207_vm0, %v183_v42, %v227_v45  ;;  %v253_v49 = vpack.c.bf16 %v245_v47, %v244_v44 }
  0xfa   :  { %v252_v50 = vpack.c.bf16 %v243_v48, %v242_v46 }
  0xfc   :  { %854 = vmatprep.mubr.bf16.mxu1 %v252_v50 }
  0xfd   :  { %855 = vmatmul.mubr.bf16.gmra.mrb[12].mxu1 %v253_v49 }
 0x1b8   :  { %v844_v53 = vpop.f32.mrb[0].mxu1 }
 0x1b9   :  { %v368_v54 = vadd.f32 %v844_v53, %v1134_v40  ;;  %v359_v55 = vpop.f32.mrb[1].mxu1 }
 0x1ba   :  { %v360_v56 = vadd.f32 %v1134_v40, %v359_v55  ;;  %v845_v57 = vpop.f32.mrb[2].mxu1 }
 0x1bb   :  { %v444_v58 = vmul.f32 %v1139_v52, %v368_v54  ;;  %v371_v59 = vadd.f32 %v845_v57, %v1134_v40  ;;  %v362_v60 = vpop.f32.mrb[3].mxu1  ;;  %vm424_vm1 = vcmp.gt.f32.partialorder %v368_v54, 0.0 }
 0x1bc   :  { %v442_v61 = vmul.f32 %v1139_v52, %v360_v56  ;;  %v363_v62 = vadd.f32 %v1134_v40, %v362_v60  ;;  %vm422_vm2 = vcmp.gt.f32.partialorder %v360_v56, 0.0 }
 0x1bd   :  { %vm425_vm3 = vcmp.gt.f32.partialorder %v371_v59, 0.0  ;;  %v445_v63 = vmul.f32 %v1139_v52, %v371_v59  ;;  %v460_v1 = vsel %vm424_vm1, %v368_v54, %v444_v58 }
 0x1be   :  { %vm423_vm4 = vcmp.gt.f32.partialorder %v363_v62, 0.0  ;;  %v443_v0 = vmul.f32 %v1139_v52, %v363_v62  ;;  %v458_v5 = vsel %vm422_vm2, %v360_v56, %v442_v61 }
 0x1bf   :  { %v461_v2 = vsel %vm425_vm3, %v371_v59, %v445_v63  ;;  %v739_v63 = vld [vmem:[%s1195_s7] ss:$0 sm:$0xff]  ;;  %s707_s7 = sshll.u32 %s934_s6, 4  ;;  %s708_s7 = int_to_ptr.vmem [resolvable:$true] %s707_s7 }
 0x1c0   :  { %v475_v3 = vpack.c.bf16 %v461_v2, %v460_v1  ;;  %v848_v4 = vpop.f32.mrb[4].mxu1  ;;  %v459_v6 = vsel %vm423_vm4, %v363_v62, %v443_v0  ;;  %s910_s29 = scalar_lea.vmem %s708_s7, 256  ;;  %p915_p1 = scmp.lt.s32.totalorder %s708_s7, %s708_s7 }
 0x1c1   :  { %v384_v7 = vadd.f32 %v848_v4, %v1134_v40  ;;  %v375_v8 = vpop.f32.mrb[5].mxu1  ;;  %v474_v9 = vpack.c.bf16 %v459_v6, %v458_v5  ;;  %p911_p0 = scmp.ne.s32.totalorder %s708_s7, %s910_s29  ;;  %p916_p2 = scmp.lt.s32.totalorder %s910_s29, %s910_s29 }
 0x1c2   :  { %v376_v10 = vadd.f32 %v1134_v40, %v375_v8  ;;  %v849_v11 = vpop.f32.mrb[6].mxu1 }
 0x1c3   :  { %v448_v12 = vmul.f32 %v1139_v52, %v384_v7  ;;  %v387_v13 = vadd.f32 %v849_v11, %v1134_v40  ;;  %v378_v14 = vpop.f32.mrb[7].mxu1  ;;  %874 = vmatprep.mubr.bf16.mxu0 %v474_v9  ;;  %vm428_vm5 = vcmp.gt.f32.partialorder %v384_v7, 0.0  ;;  %p917_p3 = por %p916_p2, %p915_p1 }
 0x1c4   :  { %v446_v15 = vmul.f32 %v1139_v52, %v376_v10  ;;  %v379_v16 = vadd.f32 %v1134_v40, %v378_v14  ;;  %875 = vmatmul.mubr.bf16.vlgmr.msra.gmra.mrb[16].mxu0 %v475_v3  ;;  %vm426_vm6 = vcmp.gt.f32.partialorder %v376_v10, 0.0 }
 0x1c5   :  { %vm429_vm7 = vcmp.gt.f32.partialorder %v387_v13, 0.0  ;;  %v449_v17 = vmul.f32 %v1139_v52, %v387_v13  ;;  %v464_v19 = vsel %vm428_vm5, %v384_v7, %v448_v12  ;;  %p918_p4 = pnand %p917_p3, %p911_p0 }
 0x1c6   :  { %vm427_vm8 = vcmp.gt.f32.partialorder %v379_v16, 0.0  ;;  %v447_v18 = vmul.f32 %v1139_v52, %v379_v16  ;;  %v462_v22 = vsel %vm426_vm6, %v376_v10, %v446_v15 }
 0x1c7   :  { %v465_v20 = vsel %vm429_vm7, %v387_v13, %v449_v17 }
 0x1c8   :  { %v852_v21 = vpop.f32.mrb[8].mxu1  ;;  %v463_v23 = vsel %vm427_vm8, %v379_v16, %v447_v18  ;;  %v477_v24 = vpack.c.bf16 %v465_v20, %v464_v19 }
 0x1c9   :  { %v400_v25 = vadd.f32 %v852_v21, %v1134_v40  ;;  %v391_v26 = vpop.f32.mrb[9].mxu1  ;;  %v476_v27 = vpack.c.bf16 %v463_v23, %v462_v22 }
 0x1ca   :  { %v392_v28 = vadd.f32 %v1134_v40, %v391_v26  ;;  %v853_v29 = vpop.f32.mrb[10].mxu1 }
 0x1cb   :  { %vm432_vm9 = vcmp.gt.f32.partialorder %v400_v25, 0.0  ;;  %v452_v30 = vmul.f32 %v1139_v52, %v400_v25  ;;  %v403_v31 = vadd.f32 %v853_v29, %v1134_v40  ;;  %878 = vmatprep.mubr.bf16.mxu0 %v476_v27  ;;  %v394_v32 = vpop.f32.mrb[11].mxu1 }
 0x1cc   :  { %vm430_vm10 = vcmp.gt.f32.partialorder %v392_v28, 0.0  ;;  %v450_v33 = vmul.f32 %v1139_v52, %v392_v28  ;;  %v395_v34 = vadd.f32 %v1134_v40, %v394_v32  ;;  %879 = vmatmul.mubr.bf16.gmra.mrb[20].mxu0 %v477_v24 }
 0x1cd   :  { %vm433_vm11 = vcmp.gt.f32.partialorder %v403_v31, 0.0  ;;  %v453_v35 = vmul.f32 %v1139_v52, %v403_v31  ;;  %v468_v36 = vsel %vm432_vm9, %v400_v25, %v452_v30 }
 0x1ce   :  { %vm431_vm12 = vcmp.gt.f32.partialorder %v395_v34, 0.0  ;;  %v451_v37 = vmul.f32 %v1139_v52, %v395_v34  ;;  %v466_v38 = vsel %vm430_vm10, %v392_v28, %v450_v33 }
 0x1cf   :  { %v469_v41 = vsel %vm433_vm11, %v403_v31, %v453_v35 }
 0x1d0   :  { %v467_v42 = vsel %vm431_vm12, %v395_v34, %v451_v37  ;;  %v479_v43 = vpack.c.bf16 %v469_v41, %v468_v36  ;;  %v856_v44 = vpop.f32.mrb[12].mxu1 }
 0x1d1   :  { %v478_v45 = vpack.c.bf16 %v467_v42, %v466_v38  ;;  %v416_v46 = vadd.f32 %v856_v44, %v1134_v40  ;;  %v407_v47 = vpop.f32.mrb[13].mxu1 }
 0x1d2   :  { %v408_v48 = vadd.f32 %v1134_v40, %v407_v47  ;;  %v857_v49 = vpop.f32.mrb[14].mxu1 }
 0x1d3   :  { %882 = vmatprep.mubr.bf16.mxu0 %v478_v45  ;;  %vm436_vm13 = vcmp.gt.f32.partialorder %v416_v46, 0.0  ;;  %v456_v50 = vmul.f32 %v1139_v52, %v416_v46  ;;  %v419_v51 = vadd.f32 %v857_v49, %v1134_v40  ;;  %v410_v39 = vpop.f32.mrb[15].mxu1 }
 0x1d4   :  { %883 = vmatmul.mubr.bf16.gmra.mrb[24].mxu0 %v479_v43  ;;  %vm434_vm14 = vcmp.gt.f32.partialorder %v408_v48, 0.0  ;;  %v454_v53 = vmul.f32 %v1139_v52, %v408_v48  ;;  %v411_v54 = vadd.f32 %v1134_v40, %v410_v39 }
 0x1d5   :  { %vm437_vm15 = vcmp.gt.f32.partialorder %v419_v51, 0.0  ;;  %v457_v55 = vmul.f32 %v1139_v52, %v419_v51  ;;  %v472_v56 = vsel %vm436_vm13, %v416_v46, %v456_v50 }
 0x1d6   :  { %vm435_vm0 = vcmp.gt.f32.partialorder %v411_v54, 0.0  ;;  %v455_v57 = vmul.f32 %v1139_v52, %v411_v54  ;;  %v470_v58 = vsel %vm434_vm14, %v408_v48, %v454_v53 }
 0x1d7   :  { %v473_v59 = vsel %vm437_vm15, %v419_v51, %v457_v55 }
 0x1d8   :  { %v471_v60 = vsel %vm435_vm0, %v411_v54, %v455_v57  ;;  %v481_v61 = vpack.c.bf16 %v473_v59, %v472_v56 }
 0x1d9   :  { %v480_v62 = vpack.c.bf16 %v471_v60, %v470_v58 }
 0x1db   :  { %886 = vmatprep.mubr.bf16.mxu0 %v480_v62 }
 0x1dc   :  { %887 = vmatmul.mubr.bf16.gmra.mrb[28].mxu0 %v481_v61 }
 0x297   :  { %v876_v0 = vpop.f32.mrb[16].mxu0 }
 0x298   :  { %v587_v40 = vpop.f32.mrb[17].mxu0  ;;  %v596_v6 = vadd.f32 %v876_v0, %v739_v63 }
 0x299   :  { %v877_v1 = vpop.f32.mrb[18].mxu0  ;;  %v588_v2 = vadd.f32 %v739_v63, %v587_v40 }
 0x29a   :  { %v590_v3 = vpop.f32.mrb[19].mxu0  ;;  %v599_v9 = vadd.f32 %v877_v1, %v739_v63 }
 0x29b   :  { %650 = vxpose.xlu0.b32.start [1/16] (narrow) %v588_v2, 32  ;;  %v591_v4 = vadd.f32 %v739_v63, %v590_v3 }
 0x29f   :  { %v880_v5 = vpop.f32.mrb[20].mxu0  ;;  %651 = vxpose.xlu0.b32.cont [2/16] (narrow) %v591_v4, 32 }
 0x2a0   :  { %v603_v52 = vpop.f32.mrb[21].mxu0  ;;  %v612_v18 = vadd.f32 %v880_v5, %v739_v63 }
 0x2a1   :  { %v881_v7 = vpop.f32.mrb[22].mxu0  ;;  %v604_v12 = vadd.f32 %v739_v63, %v603_v52 }
 0x2a2   :  { %v606_v8 = vpop.f32.mrb[23].mxu0  ;;  %v615_v21 = vadd.f32 %v881_v7, %v739_v63 }
 0x2a3   :  { %652 = vxpose.xlu0.b32.cont [3/16] (narrow) %v596_v6, 32  ;;  %v607_v15 = vadd.f32 %v739_v63, %v606_v8 }
 0x2a7   :  { %653 = vxpose.xlu0.b32.cont [4/16] (narrow) %v599_v9, 32  ;;  %v884_v10 = vpop.f32.mrb[24].mxu0 }
 0x2a8   :  { %v619_v11 = vpop.f32.mrb[25].mxu0  ;;  %v628_v24 = vadd.f32 %v884_v10, %v739_v63 }
 0x2a9   :  { %v885_v13 = vpop.f32.mrb[26].mxu0  ;;  %v620_v22 = vadd.f32 %v739_v63, %v619_v11 }
 0x2aa   :  { %v622_v14 = vpop.f32.mrb[27].mxu0  ;;  %v631_v25 = vadd.f32 %v885_v13, %v739_v63 }
 0x2ab   :  { %654 = vxpose.xlu0.b32.cont [5/16] (narrow) %v604_v12, 32  ;;  %v623_v23 = vadd.f32 %v739_v63, %v622_v14 }
 0x2af   :  { %655 = vxpose.xlu0.b32.cont [6/16] (narrow) %v607_v15, 32  ;;  %v888_v16 = vpop.f32.mrb[28].mxu0 }
 0x2b0   :  { %v635_v17 = vpop.f32.mrb[29].mxu0  ;;  %v644_v28 = vadd.f32 %v888_v16, %v739_v63 }
 0x2b1   :  { %v889_v19 = vpop.f32.mrb[30].mxu0  ;;  %v636_v26 = vadd.f32 %v739_v63, %v635_v17 }
 0x2b2   :  { %v638_v20 = vpop.f32.mrb[31].mxu0  ;;  %v647_v29 = vadd.f32 %v889_v19, %v739_v63 }
 0x2b3   :  { %656 = vxpose.xlu0.b32.cont [7/16] (narrow) %v612_v18, 32  ;;  %v639_v27 = vadd.f32 %v739_v63, %v638_v20 }
 0x2b7   :  { %657 = vxpose.xlu0.b32.cont [8/16] (narrow) %v615_v21, 32 }
 0x2bb   :  { %658 = vxpose.xlu0.b32.cont [9/16] (narrow) %v620_v22, 32 }
 0x2bf   :  { %659 = vxpose.xlu0.b32.cont [10/16] (narrow) %v623_v23, 32 }
 0x2c3   :  { %660 = vxpose.xlu0.b32.cont [11/16] (narrow) %v628_v24, 32 }
 0x2c7   :  { %661 = vxpose.xlu0.b32.cont [12/16] (narrow) %v631_v25, 32 }
 0x2cb   :  { %662 = vxpose.xlu0.b32.cont [13/16] (narrow) %v636_v26, 32 }
 0x2cf   :  { %663 = vxpose.xlu0.b32.cont [14/16] (narrow) %v639_v27, 32 }
 0x2d3   :  { %664 = vxpose.xlu0.b32.cont [15/16] (narrow) %v644_v28, 32 }
 0x2d7   :  { %665 = vxpose.xlu0.b32.end [16/16] (narrow) %v647_v29, 32 }
 0x31b   :  { %v666_v30 = vpop.trf.xlu0 }
 0x31f   :  { %v667_v31 = vpop.trf.xlu0 }
 0x320   :  { %v759_v32 = vpack.c.bf16 %v667_v31, %v666_v30 }
 0x322   :  { %760 = vst [vmem:[#allocation2] sm:$0xff] %v759_v32  }
 0x323   :  { %v668_v33 = vpop.trf.xlu0 }
 0x327   :  { %v669_v34 = vpop.trf.xlu0 }
 0x328   :  { %v764_v35 = vpack.c.bf16 %v669_v34, %v668_v33 }
 0x32a   :  { %766 = vst [vmem:[#allocation2 + $0x8] sm:$0xff] %v764_v35  }
 0x32b   :  { %921 = shalt.err (!%p918_p4)
}
 0x32c   :  { %s922_s9 = scalar_lea.hbm %s1196_s8, 256 }
 0x32d   :  { %p923_p5 = scmp.ne.s32.totalorder %s1196_s8, %s922_s9  ;;  %p926_p6 = scmp.lt.u32.totalorder %s922_s9, %s1196_s8 }
 0x32f   :  { %p928_p7 = pnand %p926_p6, %p923_p5 }
 0x331   :  { %931 = shalt.err (!%p928_p7)
}
 0x332   :  { %s935_s4 = smov 64   ;;  %s936_s14 = smov 4  }
 0x333   :  { %713 = dma.vmem_to_hbm [thread:$0]  %s708_s7, 256, %s1196_s8, [#allocation3], %s935_s4, %s935_s4, %s936_s14  }
 0x334   :  { %932 = dma.done.wait [#allocation3], 256  }
 0x335   :  { %933 = vsyncadd [#allocation3], 4294967040 }
 0x336   :  { %717 = vsyncpa [#allocation3], 1 }

</bundles_post_ra>
